<compile_context>
chip_gen: v7x
topology: tpu7x:2x2x1
jax: 0.10.0
libtpu: 0.0.40
codegen_flags: <defaults>
</compile_context>

<pallas_src>
import numpy as np
import jax
import jax.numpy as jnp
from jax import lax
from jax.experimental import pallas as pl
from jax.experimental.pallas import tpu as pltpu


_BLOCK_BUDGET_BYTES = 4 * 1024 * 1024     # target per-block size (x4 with buffers)
_BLOCK_HARD_CAP_BYTES = 6 * 1024 * 1024   # clamp for awkward row counts
_LANE_TILE_CAP = 4096                     # elements; bounds per-block code size
_VMEM_LIMIT_BYTES = 32 * 1024 * 1024      # safe on v5e/v6e/v7x, covers 4 buffers


# ---------------------------------------------------------------------------
# Tiling helpers
# ---------------------------------------------------------------------------

def _sublanes(dtype):
    """Native sublane count of the dtype's packed vreg tile (8/16/32)."""
    return max(8, 32 // jnp.dtype(dtype).itemsize)


def _divisors(n):
    out = []
    i = 1
    while i * i <= n:
        if n % i == 0:
            out.append(i)
            if i != n // i:
                out.append(n // i)
        i += 1
    return sorted(out)


def _pick_lane_tile(L, max_elems):
    """Largest lane tile dividing L that is a multiple of 128 and <= max_elems.

    If L is not a multiple of 128 the caller guarantees L is a power of two
    (< 128) and the tile is the whole axis.
    """
    if L % 128 != 0:
        return L
    best = 128
    for d in _divisors(L // 128):
        tl = 128 * d
        if best < tl <= max_elems:
            best = tl
    return best


def _choose_tiles(M, L, itemsize, sub):
    tl = _pick_lane_tile(L, _LANE_TILE_CAP)
    budget_rows = max(1, _BLOCK_BUDGET_BYTES // (tl * itemsize))
    cands = [d for d in _divisors(M) if d % sub == 0 or d == M]
    fitting = [d for d in cands if d <= budget_rows]
    rm = max(fitting) if fitting else min(cands)
    # Clamp pathological row counts (M with no small divisor) by shrinking the
    # lane tile so one block (x4 double-buffered in+out) stays inside VMEM.
    if rm * tl * itemsize > _BLOCK_HARD_CAP_BYTES and L % 128 == 0:
        tl = _pick_lane_tile(L, max(128, _BLOCK_HARD_CAP_BYTES // (rm * itemsize)))
    # Best-effort megacore split: if everything landed in a single block,
    # split one parallel axis so v7x's two TensorCores both get work.
    if rm == M and tl == L:
        if M % 2 == 0 and (M // 2) % sub == 0:
            rm = M // 2
        elif tl % 256 == 0:
            tl //= 2
    return rm, tl


# ---------------------------------------------------------------------------
# Kernel: reverse the last axis of a (rm, tl) tile.
# The block-level (coarse) part of the reversal is carried by the output
# BlockSpec index_map; this kernel only reverses within its own tile.
# ---------------------------------------------------------------------------

def _rev_lane_kernel(x_ref, o_ref):
    rm, tl = x_ref.shape
    w = min(tl, 128)          # strip width == per-vreg lane extent
    G = tl // w               # strips per tile (tl % 128 == 0 or tl == w)
    itemsize = jnp.dtype(x_ref.dtype).itemsize
    sub = max(8, 32 // itemsize)          # native sublane count for dtype

    # Row-chunk per loop iteration: ~8 vregs of work to amortize the loop
    # bookkeeping while keeping live ranges and code size bounded.
    chunk = sub * max(1, 8 // G)
    if rm % chunk != 0:
        chunk = rm
        for c in (8 * sub, 4 * sub, 2 * sub, sub):
            if rm % c == 0:
                chunk = c
                break
    n_chunks = rm // chunk

    shifts = []
    s = 1
    while s < w:
        shifts.append(s)
        s *= 2

    def process_rows(r0):
        # Lane index within a strip.  The per-stage keep-masks derived from
        # it are recomputed on the VPU: the XLU rolls are the binding slot,
        # so this is free filler and avoids holding masks live.
        col = lax.broadcasted_iota(jnp.int32, (chunk, w), 1)
        for g in range(G):                      # static strip loop
            src = (G - 1 - g) * w               # output strip g <- input strip G-1-g
            strip = x_ref[pl.ds(r0, chunk), pl.ds(src, w)]
            for sh in shifts:                   # exact in-register reversal
                fwd = pltpu.roll(strip, w - sh, 1)   # fwd[i] = strip[i + sh]
                bwd = pltpu.roll(strip, sh, 1)       # bwd[i] = strip[i - sh]
                strip = jnp.where((col & sh) == 0, fwd, bwd)
            o_ref[pl.ds(r0, chunk), pl.ds(g * w, w)] = strip

    if n_chunks == 1:
        process_rows(0)
    else:
        def body(r, carry):
            process_rows(pl.multiple_of(r * chunk, chunk))
            return carry
        lax.fori_loop(0, n_chunks, body, 0)


# ---------------------------------------------------------------------------
# pallas_call wrapper
# ---------------------------------------------------------------------------

def _reverse_last_axis_2d(x2):
    M, L = x2.shape
    itemsize = jnp.dtype(x2.dtype).itemsize
    sub = _sublanes(x2.dtype)
    rm, tl = _choose_tiles(M, L, itemsize, sub)
    gm, gl = M // rm, L // tl
    return pl.pallas_call(
        _rev_lane_kernel,
        out_shape=jax.ShapeDtypeStruct((M, L), x2.dtype),
        grid=(gm, gl),
        in_specs=[pl.BlockSpec((rm, tl), lambda i, j: (i, j))],
        # Coarse flip is pure DMA addressing: write to the mirrored lane block.
        out_specs=pl.BlockSpec((rm, tl), lambda i, j, gl=gl: (i, gl - 1 - j)),
        compiler_params=pltpu.CompilerParams(
            dimension_semantics=("parallel", "parallel"),
            vmem_limit_bytes=_VMEM_LIMIT_BYTES),
        cost_estimate=pl.CostEstimate(flops=0, transcendentals=0,
                                      bytes_accessed=2 * M * L * itemsize),
    )(x2)


def _flip_spatial(x):
    """Reverse all spatial axes (everything after N, C) of x."""
    shape = x.shape
    M = int(np.prod(shape[:2]))
    L = int(np.prod(shape[2:]))
    x2 = x.reshape(M, L)
    if L <= 1:
        y2 = x2
    elif L % 128 == 0 or (L & (L - 1)) == 0:
        y2 = _reverse_last_axis_2d(x2)
    else:
        # Generic length: pad the lane axis up to a multiple of 128, reverse,
        # then drop the (now-leading) padding: flip(concat(x, 0s)) ==
        # concat(0s, flip(x)).
        # TODO(synk): handle the remainder in-kernel to avoid the pad/slice copies.
        p = (-L) % 128
        xp = jnp.pad(x2, ((0, 0), (0, p)))
        y2 = _reverse_last_axis_2d(xp)[:, p:]
    return y2.reshape(shape)


def switch_reverse(x, reverse):
    """Pallas equivalent of SwitchReverse().forward(x, reverse)."""
    xd = x.ndim
    if xd not in (3, 4):
        raise ValueError(f"SwitchReverse expects 3D or 4D input, got {xd}D")

    if isinstance(reverse, (bool, int, np.bool_, np.integer)):
        # Static flag: reverse=False costs nothing (no copy, no kernel).
        return _flip_spatial(x) if bool(reverse) else x

    # Traced / device scalar: branch outside the kernel so the False path is
    # a plain identity instead of a full read+write copy kernel.
    pred = jnp.asarray(reverse).astype(bool).reshape(())
    return lax.cond(pred, _flip_spatial, lambda y: y, x)


if __name__ == "__main__":
    key = jax.random.PRNGKey(0)
    k1, k2, k3, k4, k5, k6 = jax.random.split(key, 6)

    # 4D case: (N, C, H, W) — flips axes (2, 3) when reverse=True.
    x4 = jax.random.normal(k1, (2, 4, 16, 16), dtype=jnp.float32)
    out4_rev = jax.block_until_ready(switch_reverse(x4, True))
    out4_fwd = jax.block_until_ready(switch_reverse(x4, False))
    assert out4_rev.shape == x4.shape and out4_rev.dtype == x4.dtype
    assert jnp.array_equal(out4_rev, jnp.flip(x4, axis=(2, 3)))
    assert jnp.array_equal(out4_fwd, x4)

    # 3D case: (N, C, L) — flips axis 2 when reverse=True.
    x3 = jax.random.normal(k2, (2, 4, 128), dtype=jnp.float32)
    assert jnp.array_equal(jax.block_until_ready(switch_reverse(x3, True)),
                           jnp.flip(x3, axis=2))
    assert jnp.array_equal(switch_reverse(x3, False), x3)

    # Multi-block tiling (coarse flip carried by the output index_map).
    x4b = jax.random.normal(k3, (1, 3, 24, 512), dtype=jnp.float32)
    assert jnp.array_equal(jax.block_until_ready(switch_reverse(x4b, True)),
                           jnp.flip(x4b, axis=(2, 3)))
    x3b = jax.random.normal(k4, (2, 8, 2048), dtype=jnp.float32)
    assert jnp.array_equal(jax.block_until_ready(switch_reverse(x3b, True)),
                           jnp.flip(x3b, axis=2))

    # Spatial size not a multiple of 128 (pad-and-slice fallback path).
    x4c = jax.random.normal(k5, (2, 3, 24, 20), dtype=jnp.float32)
    assert jnp.array_equal(jax.block_until_ready(switch_reverse(x4c, True)),
                           jnp.flip(x4c, axis=(2, 3)))

    # bf16 path (dtype-aware sublane tiling).
    x4h = jax.random.normal(k6, (2, 8, 8, 32), dtype=jnp.bfloat16)
    assert jnp.array_equal(jax.block_until_ready(switch_reverse(x4h, True)),
                           jnp.flip(x4h, axis=(2, 3)))

    # Traced flag path (lax.cond around the kernel) under jit.
    jit_sr = jax.jit(switch_reverse)
    assert jnp.array_equal(jax.block_until_ready(jit_sr(x4, jnp.asarray(True))),
                           jnp.flip(x4, axis=(2, 3)))
    assert jnp.array_equal(jax.block_until_ready(jit_sr(x4, jnp.asarray(False))),
                           x4)

    print("KERNEL_OK")
</pallas_src>

<mosaic_0001>
module attributes {stable_mosaic.version = 11 : i64} {
  func.func @_rev_lane_kernel(%arg0: i32, %arg1: i32, %arg2: memref<8x128xf32, #tpu.memory_space<vmem>>, %arg3: memref<8x128xf32, #tpu.memory_space<vmem>>) attributes {dimension_semantics = [#tpu.dimension_semantics<parallel>, #tpu.dimension_semantics<parallel>], iteration_bounds = array<i64: 1, 2>, scalar_prefetch = 0 : i64, scratch_operands = 0 : i64, tpu.core_type = #tpu.core_type<tc>, window_params = [{transform_indices = @transform_0, window_bounds = array<i64: 8, 128>}, {transform_indices = @transform_1, window_bounds = array<i64: 8, 128>}]} {
    %0 = tpu.iota {dimensions = array<i32: 1>} : vector<8x128xi32>
    %c0 = arith.constant 0 : index
    %c0_0 = arith.constant 0 : index
    %1 = vector.load %arg2[%c0, %c0_0] : memref<8x128xf32, #tpu.memory_space<vmem>>, vector<8x128xf32>
    %c127_i32 = arith.constant 127 : i32
    %2 = tpu.dynamic_rotate %1 by %c127_i32 dim 1 : vector<8x128xf32>, i32 -> vector<8x128xf32>
    %c1_i32 = arith.constant 1 : i32
    %3 = tpu.dynamic_rotate %1 by %c1_i32 dim 1 : vector<8x128xf32>, i32 -> vector<8x128xf32>
    %c1_i32_1 = arith.constant 1 : i32
    %4 = vector.broadcast %c1_i32_1 : i32 to vector<8x128xi32>
    %5 = arith.andi %0, %4 : vector<8x128xi32>
    %c0_i32 = arith.constant 0 : i32
    %6 = vector.broadcast %c0_i32 : i32 to vector<8x128xi32>
    %7 = arith.cmpi eq, %5, %6 : vector<8x128xi32>
    %8 = arith.select %7, %2, %3 : vector<8x128xi1>, vector<8x128xf32>
    %c126_i32 = arith.constant 126 : i32
    %9 = tpu.dynamic_rotate %8 by %c126_i32 dim 1 : vector<8x128xf32>, i32 -> vector<8x128xf32>
    %c2_i32 = arith.constant 2 : i32
    %10 = tpu.dynamic_rotate %8 by %c2_i32 dim 1 : vector<8x128xf32>, i32 -> vector<8x128xf32>
    %c2_i32_2 = arith.constant 2 : i32
    %11 = vector.broadcast %c2_i32_2 : i32 to vector<8x128xi32>
    %12 = arith.andi %0, %11 : vector<8x128xi32>
    %c0_i32_3 = arith.constant 0 : i32
    %13 = vector.broadcast %c0_i32_3 : i32 to vector<8x128xi32>
    %14 = arith.cmpi eq, %12, %13 : vector<8x128xi32>
    %15 = arith.select %14, %9, %10 : vector<8x128xi1>, vector<8x128xf32>
    %c124_i32 = arith.constant 124 : i32
    %16 = tpu.dynamic_rotate %15 by %c124_i32 dim 1 : vector<8x128xf32>, i32 -> vector<8x128xf32>
    %c4_i32 = arith.constant 4 : i32
    %17 = tpu.dynamic_rotate %15 by %c4_i32 dim 1 : vector<8x128xf32>, i32 -> vector<8x128xf32>
    %c4_i32_4 = arith.constant 4 : i32
    %18 = vector.broadcast %c4_i32_4 : i32 to vector<8x128xi32>
    %19 = arith.andi %0, %18 : vector<8x128xi32>
    %c0_i32_5 = arith.constant 0 : i32
    %20 = vector.broadcast %c0_i32_5 : i32 to vector<8x128xi32>
    %21 = arith.cmpi eq, %19, %20 : vector<8x128xi32>
    %22 = arith.select %21, %16, %17 : vector<8x128xi1>, vector<8x128xf32>
    %c120_i32 = arith.constant 120 : i32
    %23 = tpu.dynamic_rotate %22 by %c120_i32 dim 1 : vector<8x128xf32>, i32 -> vector<8x128xf32>
    %c8_i32 = arith.constant 8 : i32
    %24 = tpu.dynamic_rotate %22 by %c8_i32 dim 1 : vector<8x128xf32>, i32 -> vector<8x128xf32>
    %c8_i32_6 = arith.constant 8 : i32
    %25 = vector.broadcast %c8_i32_6 : i32 to vector<8x128xi32>
    %26 = arith.andi %0, %25 : vector<8x128xi32>
    %c0_i32_7 = arith.constant 0 : i32
    %27 = vector.broadcast %c0_i32_7 : i32 to vector<8x128xi32>
    %28 = arith.cmpi eq, %26, %27 : vector<8x128xi32>
    %29 = arith.select %28, %23, %24 : vector<8x128xi1>, vector<8x128xf32>
    %c112_i32 = arith.constant 112 : i32
    %30 = tpu.dynamic_rotate %29 by %c112_i32 dim 1 : vector<8x128xf32>, i32 -> vector<8x128xf32>
    %c16_i32 = arith.constant 16 : i32
    %31 = tpu.dynamic_rotate %29 by %c16_i32 dim 1 : vector<8x128xf32>, i32 -> vector<8x128xf32>
    %c16_i32_8 = arith.constant 16 : i32
    %32 = vector.broadcast %c16_i32_8 : i32 to vector<8x128xi32>
    %33 = arith.andi %0, %32 : vector<8x128xi32>
    %c0_i32_9 = arith.constant 0 : i32
    %34 = vector.broadcast %c0_i32_9 : i32 to vector<8x128xi32>
    %35 = arith.cmpi eq, %33, %34 : vector<8x128xi32>
    %36 = arith.select %35, %30, %31 : vector<8x128xi1>, vector<8x128xf32>
    %c96_i32 = arith.constant 96 : i32
    %37 = tpu.dynamic_rotate %36 by %c96_i32 dim 1 : vector<8x128xf32>, i32 -> vector<8x128xf32>
    %c32_i32 = arith.constant 32 : i32
    %38 = tpu.dynamic_rotate %36 by %c32_i32 dim 1 : vector<8x128xf32>, i32 -> vector<8x128xf32>
    %c32_i32_10 = arith.constant 32 : i32
    %39 = vector.broadcast %c32_i32_10 : i32 to vector<8x128xi32>
    %40 = arith.andi %0, %39 : vector<8x128xi32>
    %c0_i32_11 = arith.constant 0 : i32
    %41 = vector.broadcast %c0_i32_11 : i32 to vector<8x128xi32>
    %42 = arith.cmpi eq, %40, %41 : vector<8x128xi32>
    %43 = arith.select %42, %37, %38 : vector<8x128xi1>, vector<8x128xf32>
    %c64_i32 = arith.constant 64 : i32
    %44 = tpu.dynamic_rotate %43 by %c64_i32 dim 1 : vector<8x128xf32>, i32 -> vector<8x128xf32>
    %c64_i32_12 = arith.constant 64 : i32
    %45 = tpu.dynamic_rotate %43 by %c64_i32_12 dim 1 : vector<8x128xf32>, i32 -> vector<8x128xf32>
    %c64_i32_13 = arith.constant 64 : i32
    %46 = vector.broadcast %c64_i32_13 : i32 to vector<8x128xi32>
    %47 = arith.andi %0, %46 : vector<8x128xi32>
    %c0_i32_14 = arith.constant 0 : i32
    %48 = vector.broadcast %c0_i32_14 : i32 to vector<8x128xi32>
    %49 = arith.cmpi eq, %47, %48 : vector<8x128xi32>
    %50 = arith.select %49, %44, %45 : vector<8x128xi1>, vector<8x128xf32>
    %c0_15 = arith.constant 0 : index
    %c0_16 = arith.constant 0 : index
    %51 = vector.load %arg3[%c0_15, %c0_16] : memref<8x128xf32, #tpu.memory_space<vmem>>, vector<8x128xf32>
    tpu.vector_store %arg3[%c0_15, %c0_16], %50 {strides = array<i32>} : memref<8x128xf32, #tpu.memory_space<vmem>>, vector<8x128xf32>,
    return
  }
  func.func @transform_0(%arg0: i32, %arg1: i32) -> (i32, i32) {
    %c0_i32 = arith.constant 0 : i32
    return %arg0, %arg1 : i32, i32
  }
  func.func @transform_1(%arg0: i32, %arg1: i32) -> (i32, i32) {
    %c1_i32 = arith.constant 1 : i32
    %0 = arith.subi %c1_i32, %arg1 : i32
    %c0_i32 = arith.constant 0 : i32
    return %arg0, %0 : i32, i32
  }
}

</mosaic_0001>

<bundles_post_ra>
// kernel: tpu_custom_call.1
= control target key start
LH: loop header
LB: loop body
LE: loop exit
PB: predicated region body
PF: predicated region fallthrough
CT: control target
= control target key end

     0   :  { %6 = vsyncpa [#allocation3], 0  ;;  %s774_s0 = inlined_call_operand.hbm [shape: f32[8,256], index: 0, kind: input, shape index: {}]   ;;  %s775_s1 = inlined_call_operand.hbm [shape: f32[8,256], index: 1, kind: output, shape index: {}]  }
   0x1   :  { %8 = vsyncpa [#allocation3 + $0x1], 0 }
   0x2   :  { %9 = vsyncpa [#allocation4], 0 }
   0x3   :  { %11 = vsyncpa [#allocation4 + $0x1], 0  ;;  %s575_s6 = smov 0   ;;  %s577_s7 = smov 0  }
   0x4   :  { %s579_s8 = smov 0   ;;  %s581_s9 = smov 0  }
   0x5   :  { %s583_s10 = smov 0   ;;  %s585_s11 = smov 0  }
   0x6   :  { %s587_s12 = smov 0   ;;  %s589_s13 = smov 0  }
   0x7   :  { %s591_s14 = smov 0  }
   0x8 LB: > { %s300_s15 = sadd.s32 4294967295, %s548_s14   ;;  %s301_s16 = sadd.s32 4294967294, %s548_s14   ;;  %s548_s14 = sphi %s591_s14, %s17_s14   ;;  %s544_s13 = sphi %s589_s13, %s794_s13   ;;  %s540_s12 = sphi %s587_s12, %s793_s12   ;;  %s536_s11 = sphi %s585_s11, %s792_s11   ;;  %s532_s10 = sphi %s583_s10, %s791_s10   ;;  %s528_s9 = sphi %s581_s9, %s790_s9   ;;  %s524_s8 = sphi %s579_s8, %s789_s8   ;;  %s520_s7 = sphi %s577_s7, %s788_s7   ;;  %s516_s6 = sphi %s575_s6, %s787_s6  }
   0x9   : > { %s26_s17 = sadd.s32 1, %s544_s13  ;;  %s38_s18 = sadd.s32 1, %s536_s11 }
   0xa   : > { %p27_p0 = scmp.ge.s32.totalorder %s26_s17, 2  ;;  %p45_p1 = scmp.ne.s32.totalorder %s536_s11, %s532_s10 }
   0xb   : > { %p46_p2 = scmp.eq.s32.totalorder %s548_s14, 0  ;;  %p51_p3 = scmp.ne.s32.totalorder %s532_s10, %s528_s9 }
   0xc   : > { %s796_s17 = smov (%p27_p0, %s26_s17), 0  ;;  %p52_p5 = scmp.eq.s32.totalorder %s300_s15, 0 }
   0xd   : > { %p628_p4 = por %p46_p2, %p45_p1  ;;  %s34_s20 = ssub.s32 %s544_s13, %s796_s17 }
   0xe   : > { %s61_s21 = ssub.s32 1, %s544_s13  ;;  %p36_p6 = scmp.eq.s32.totalorder %s34_s20, 0 }
   0xf   : > { %p635_p7 = por %p52_p5, %p51_p3  ;;  %s62_s23 = ssub.s32 1, %s796_s17 }
  0x10   : > { %s68_s24 = sadd.s32 1, %s524_s8  ;;  %s64_s26 = ssub.s32 %s61_s21, %s62_s23 }
  0x11   : > { %s642_s25 = scalar_select %p36_p6, %s536_s11, %s38_s18  }
  0x12   : > { %p78_p8 = scmp.ne.s32.totalorder %s524_s8, %s520_s7  ;;  %p66_p9 = scmp.eq.s32.totalorder %s64_s26, 0 }
  0x13   : > { %p79_p10 = scmp.eq.s32.totalorder %s300_s15, 1  ;;  %p84_p11 = scmp.ne.s32.totalorder %s520_s7, %s516_s6 }
  0x14   : > { %p85_p12 = scmp.eq.s32.totalorder %s301_s16, 1  ;;  %p325_p2 = scmp.lt.s32.totalorder %s548_s14, 2 }
  0x15   : > { %s649_s27 = scalar_select %p66_p9, %s524_s8, %s68_s24  }
  0x16   : > { %p651_p13 = por %p79_p10, %p78_p8  ;;  %p655_p0 = por %p85_p12, %p84_p11 }
  0x17   : > { %s105_s30 = sand.u32 1, %s536_s11   ;;  %s305_s2 = sshll.u32 %s544_s13, 7 }
  0x18   : > { %s779_s28 = scalar_select %p651_p13, 1, 0 }
  0x19   : > { %s780_s29 = scalar_select %p655_p0, 1, 0 }
  0x1a   : > { %s304_s3 = sshll.u32 %s105_s30, 3  ;;  %s666_s9 = scalar_lea.hbm %s774_s0, %s305_s2 }
  0x1b   : > { %s109_s15 = scalar_lea.vmem [#allocation2], %s304_s3  ;;  %p670_p3 = pnand %p325_p2, %p628_p4 }
  0x1c   : > { %s118_s16 = sshll.u32 %s109_s15, 4  ;;  %s106_s20 = scalar_lea.sflag [#allocation3], %s105_s30  ;;  %s674_s16 = int_to_ptr.vmem [resolvable:$true] %s118_s16 }
  0x1d   : > { %s412_s21 = scalar_lea.hbm %s666_s9, 128  ;;  %p414_p9 = pneg %p670_p3 }
  0x1e   : > { %p413_p8 = scmp.ne.s32.totalorder %s666_s9, %s412_s21  ;;  %s417_s24 = scalar_lea.hbm %s774_s0, 256 }
  0x1f   : > { %p418_p4 = scmp.lt.u32.totalorder %s666_s9, %s774_s0  ;;  %p419_p12 = scmp.lt.u32.totalorder %s417_s24, %s412_s21 }
  0x20   : > { %p415_p10 = pnand %p414_p9, %p413_p8  ;;  %p421_p1 = scmp.lt.u32.totalorder %s412_s21, %s666_s9 }
  0x21   : > { %p420_p2 = por %p419_p12, %p418_p4 }
  0x22   : > { %p416_p11 = pneg %p415_p10 }
  0x23   : > { %p422_p5 = por %p421_p1, %p420_p2 }
  0x25   : > { %p423_p6 = pnand %p422_p5, %p416_p11 }
  0x27   : > { %426 = shalt.err (!%p423_p6)
}
  0x28   : > { %s427_s30 = scalar_lea.vmem %s674_s16, 128  ;;  %s550_s3 = smov [#allocation2]  }
  0x29   : > { %p428_p8 = scmp.ne.s32.totalorder %s674_s16, %s427_s30  ;;  %s432_s4 = sshll.u32 %s550_s3, 4  ;;  %s433_s4 = int_to_ptr.vmem [resolvable:$false] %s432_s4 }
  0x2a   : > { %s434_s5 = scalar_lea.vmem %s433_s4, 256  ;;  %p435_p13 = scmp.lt.s32.totalorder %s674_s16, %s433_s4 }
  0x2b   : > { %p430_p10 = pnand %p428_p8, %p414_p9  ;;  %p436_p4 = scmp.lt.s32.totalorder %s434_s5, %s427_s30 }
  0x2d   : > { %p431_p0 = pneg %p430_p10  ;;  %p437_p12 = por %p436_p4, %p435_p13 }
  0x2f   : > { %p438_p1 = pnand %p437_p12, %p431_p0 }
  0x31   : > { %441 = shalt.err (!%p438_p1)
}
  0x32   : > { %320 = dma.hbm_to_vmem [thread:$0]  (!%p670_p3), %s666_s9, 128, %s674_s16, %s106_s20  }
  0x33   : > { %p782_p5 = scmp.lt.s32.totalorder %s548_s14, 3  ;;  %p783_p6 = scmp.ge.s32.totalorder %s548_s14, 1 }
  0x35   : > { %p124_p9 = pnand %p783_p6, %p782_p5 }
  0x36   : > { %s129_s15 = sand.u32 (!%p124_p9), 1, %s532_s10  }
  0x37   : > { %127 = sbr.rel (%p124_p9) target bundleno = 897 (0x381), region = 24  ;;  %s307_s21 = sshll.u32 (!%p124_p9), %s129_s15, 3 }
  0x38   : > { %s130_s19 = scalar_lea.sflag (!%p124_p9), [#allocation3], %s129_s15  ;;  %s133_s23 = scalar_lea.vmem (!%p124_p9), [#allocation2], %s307_s21 }
  0x3e   : > { %507 = dma.done.wait (%p635_p7), %s130_s19, 128  }
  0x3f   : > { %509 = vsyncadd (%p635_p7), %s130_s19, 4294967168  ;;  %v155_v0 = vld [vmem:[%s133_s23] sm:$0xff]  ;;  %s551_s18 = smov 127   ;;  %s552_s24 = smov 1   ;;  %v153_v1 = vlaneseq }
  0x40   : > { %156 = vrot.lane.b32.xlu0 %v155_v0, %s551_s18  ;;  %s553_s9 = smov 126   ;;  %s554_s16 = smov 2  }
  0x41   : > { %v154_v2 = vand.u32 127, %v153_v1  ;;  %s555_s22 = smov 4   ;;  %s556_s20 = smov 124  }
  0x42   : > { %s557_s26 = smov 8   ;;  %s558_s2 = smov 120  }
  0x43   : > { %v160_v3 = vand.u32 1, %v154_v2  ;;  %v167_v7 = vand.u32 2, %v154_v2  ;;  %v174_v11 = vand.u32 4, %v154_v2  ;;  %v181_v15 = vand.u32 8, %v154_v2  ;;  %s559_s30 = smov 16   ;;  %s560_s3 = smov 112  }
  0x44   : > { %158 = vrot.lane.b32.xlu0 %v155_v0, %s552_s24  ;;  %v188_v19 = vand.u32 16, %v154_v2  ;;  %s561_s4 = smov 32   ;;  %s562_s5 = smov 96   ;;  %v195_v23 = vand.u32 32, %v154_v2 }
  0x45   : > { %vm161_vm0 = vcmp.eq.s32.totalorder %v160_v3, 0  ;;  %vm168_vm1 = vcmp.eq.s32.totalorder %v167_v7, 0  ;;  %vm175_vm2 = vcmp.eq.s32.totalorder %v174_v11, 0  ;;  %vm182_vm3 = vcmp.eq.s32.totalorder %v181_v15, 0  ;;  %s563_s15 = smov 64   ;;  %s149_s21 = sand.u32 1, %s520_s7  }
  0x46   : > { %vm189_vm4 = vcmp.eq.s32.totalorder %v188_v19, 0  ;;  %vm196_vm5 = vcmp.eq.s32.totalorder %v195_v23, 0  ;;  %s308_s19 = sshll.u32 %s149_s21, 3  ;;  %s209_s23 = ssub.s32 1, %s540_s12 }
  0x47   : > { %s151_s18 = scalar_lea.vmem [#allocation5], %s308_s19  ;;  %p784_p13 = scmp.ne.s32.totalorder %s779_s28, 0 }
  0x48   : > { %s218_s24 = sshll.u32 %s151_s18, 4  ;;  %s564_s12 = smov [#allocation5]   ;;  %s714_s24 = int_to_ptr.vmem [resolvable:$true] %s218_s24 }
  0xb2   : > { %v157_v4 = vpop.permute.xlu0 %156 }
  0xb6   : > { %v159_v5 = vpop.permute.xlu0 %158 }
  0xb7   : > { %v162_v6 = vsel %vm161_vm0, %v157_v4, %v159_v5 }
  0xb8   : > { %163 = vrot.lane.b32.xlu1 %v162_v6, %s553_s9  ;;  %s310_s9 = sshll.u32 %s209_s23, 7 }
  0xbc   : > { %165 = vrot.lane.b32.xlu1 %v162_v6, %s554_s16 }
 0x12a   : > { %v164_v8 = vpop.permute.xlu1 %163 }
 0x12e   : > { %v166_v9 = vpop.permute.xlu1 %165 }
 0x12f   : > { %v169_v10 = vsel %vm168_vm1, %v164_v8, %v166_v9 }
 0x130   : > { %172 = vrot.lane.b32.xlu1 %v169_v10, %s555_s22  ;;  %170 = vrot.lane.b32.xlu0 %v169_v10, %s556_s20  ;;  %s719_s20 = scalar_lea.hbm %s775_s1, %s310_s9 }
 0x1a2   : > { %v173_v12 = vpop.permute.xlu1 %172  ;;  %v171_v13 = vpop.permute.xlu0 %170 }
 0x1a3   : > { %v176_v14 = vsel %vm175_vm2, %v171_v13, %v173_v12 }
 0x1a4   : > { %179 = vrot.lane.b32.xlu1 %v176_v14, %s557_s26  ;;  %177 = vrot.lane.b32.xlu0 %v176_v14, %s558_s2  ;;  %s202_s26 = scalar_lea.sflag [#allocation4], %s149_s21  ;;  %s442_s2 = scalar_lea.vmem %s714_s24, 128 }
 0x1a5   : > { %p443_p7 = scmp.ne.s32.totalorder %s714_s24, %s442_s2 }
 0x1a7   : > { %p444_p0 = pnand %p443_p7, %p784_p13 }
 0x1a9   : > { %p445_p3 = pneg %p444_p0 }
 0x216   : > { %v180_v16 = vpop.permute.xlu1 %179  ;;  %v178_v17 = vpop.permute.xlu0 %177 }
 0x217   : > { %v183_v18 = vsel %vm182_vm3, %v178_v17, %v180_v16 }
 0x218   : > { %186 = vrot.lane.b32.xlu1 %v183_v18, %s559_s30  ;;  %184 = vrot.lane.b32.xlu0 %v183_v18, %s560_s3  ;;  %s446_s30 = sshll.u32 %s564_s12, 4  ;;  %s447_s30 = int_to_ptr.vmem [resolvable:$false] %s446_s30 }
 0x219   : > { %s448_s3 = scalar_lea.vmem %s447_s30, 256  ;;  %p449_p11 = scmp.lt.s32.totalorder %s714_s24, %s447_s30 }
 0x21a   : > { %p450_p2 = scmp.lt.s32.totalorder %s448_s3, %s442_s2 }
 0x21c   : > { %p451_p8 = por %p450_p2, %p449_p11 }
 0x21e   : > { %p452_p10 = pnand %p451_p8, %p445_p3 }
 0x28a   : > { %v187_v20 = vpop.permute.xlu1 %186  ;;  %v185_v21 = vpop.permute.xlu0 %184 }
 0x28b   : > { %v190_v22 = vsel %vm189_vm4, %v185_v21, %v187_v20 }
 0x28c   : > { %193 = vrot.lane.b32.xlu1 %v190_v22, %s561_s4  ;;  %191 = vrot.lane.b32.xlu0 %v190_v22, %s562_s5 }
 0x2fe   : > { %v194_v24 = vpop.permute.xlu1 %193  ;;  %v192_v25 = vpop.permute.xlu0 %191 }
 0x2ff   : > { %v197_v26 = vsel %vm196_vm5, %v192_v25, %v194_v24 }
 0x300   : > { %198 = vrot.lane.b32.xlu0 %v197_v26, %s563_s15 }
 0x372   : > { %v199_v27 = vpop.permute.xlu0 %198 }
 0x373   : > { %200 = vst [vmem:[%s151_s18] sm:$0xff] %v199_v27 }
 0x374   : > { %455 = shalt.err (!%p452_p10)
}
 0x375   : > { %s456_s4 = scalar_lea.hbm %s719_s20, 128  ;;  %s460_s21 = scalar_lea.hbm %s775_s1, 256 }
 0x376   : > { %p457_p4 = scmp.ne.s32.totalorder %s719_s20, %s456_s4  ;;  %p461_p5 = scmp.lt.u32.totalorder %s719_s20, %s775_s1 }
 0x377   : > { %p462_p6 = scmp.lt.u32.totalorder %s460_s21, %s456_s4  ;;  %p464_p7 = scmp.lt.u32.totalorder %s456_s4, %s719_s20 }
 0x378   : > { %p458_p12 = pnand %p457_p4, %p784_p13 }
 0x379   : > { %p463_p9 = por %p462_p6, %p461_p5 }
 0x37a   : > { %p459_p1 = pneg %p458_p12 }
 0x37b   : > { %p465_p0 = por %p464_p7, %p463_p9 }
 0x37d   : > { %p466_p3 = pnand %p465_p0, %p459_p1 }
 0x37f   : > { %469 = shalt.err (!%p466_p3)
}
 0x380   : > { %315 = dma.vmem_to_hbm [thread:$0]  (%p784_p13), %s714_s24, 128, %s719_s20, %s202_s26  }
 0x381 PF: > { %s230_s18 = sand.u32 1, %s516_s6   ;;  %p785_p11 = scmp.ne.s32.totalorder %s780_s29, 0 }
 0x382   : > { %p786_p2 = scmp.ge.s32.totalorder %s548_s14, 2  ;;  %s231_s9 = scalar_lea.sflag [#allocation4], %s230_s18 }
 0x384   : > { %p322_p8 = pnand %p786_p2, %p785_p11 }
 0x386   : > { %511 = dma.done.wait (!%p322_p8), %s231_s9, 128  }
 0x387   : > { %513 = vsyncadd (!%p322_p8), %s231_s9, 4294967168  ;;  %s17_s14 = sadd.s32 1, %s548_s14   ;;  %s787_s6 = smov %s520_s7 }
 0x388   : > { %p14_p10 = scmp.ge.s32.totalorder %s17_s14, 4   ;;  %s788_s7 = smov %s524_s8 }
 0x389   : > { %s789_s8 = smov %s649_s27  ;;  %s790_s9 = smov %s532_s10 }
 0x38a   : > { %s791_s10 = smov %s536_s11  ;;  %s792_s11 = smov %s642_s25 }
 0x38b   : > { %s793_s12 = smov %s544_s13  ;;  %s794_s13 = smov %s796_s17 }
 0x38c   :  { %16 = sbr.rel (!%p14_p10) target bundleno = 8 (0x8), region = 69 }
 0x393   :  { %236 = vsyncpa [#allocation3], 1 }
 0x394   :  { %238 = vsyncpa [#allocation3 + $0x1], 1 }
 0x395   :  { %239 = vsyncpa [#allocation4], 1 }
 0x396   :  { %241 = vsyncpa [#allocation4 + $0x1], 1 }

</bundles_post_ra>
